<compile_context>
chip_gen: v6e
topology: v6e:2x2x1
jax: 0.10.0
libtpu: 0.0.40
codegen_flags: <defaults>
</compile_context>

<pallas_src>
import jax
import jax.numpy as jnp
from jax.experimental import pallas as pl
from jax.experimental.pallas import tpu as pltpu


def _head_kernel(x_ref, w_ref, b_ref, o_ref):
    # x_ref: (tm, K) f32   w_ref: (K, N) bf16   b_ref: (1, N) f32   o_ref: (tm, N) f32
    # bf16 cast is free VPU work hidden under the input DMA; accumulate in f32.
    x = x_ref[...].astype(w_ref.dtype)
    z = jnp.dot(x, w_ref[...], preferred_element_type=jnp.float32)
    z = z + b_ref[...]                      # bias broadcast over rows (f32 epilogue,
    o_ref[...] = jax.nn.sigmoid(z).astype(o_ref.dtype)  # safe on v5e: no bf16 VPU/EUP)


def all_steps_head(payload, seq_lens, weight, bias, *,
                   block_rows=8192, compute_dtype=jnp.bfloat16):
    """Apply the per-timestep Linear+Sigmoid head of AllStepsHead.

    payload:  [B, T, H] float32
    seq_lens: [B] int32 (passed through untouched, like PaddedBatch.seq_lens)
    weight:   [H, O] float32
    bias:     [O]    float32
    returns:  (out [B, T, O] float32, seq_lens)
    """
    B, T, H = payload.shape
    O = weight.shape[1]
    BT = B * T

    # Lane-packing factor: fold R consecutive rows into the lane dim so the
    # output slab is lane-dense (R*O == 128).  Falls back to the plain layout
    # when O doesn't divide 128 or BT isn't a multiple of R.
    # TODO(synk): a ragged BT could use the packed path for the divisible
    #             prefix plus a tiny remainder call; not worth it here.
    if 0 < O < 128 and 128 % O == 0 and BT % (128 // O) == 0:
        R = 128 // O
    else:
        R = 1

    if R > 1:
        G = BT // R
        x_in = payload.reshape(G, R * H)                   # contiguous -> free view
        w_in = jnp.kron(jnp.eye(R, dtype=weight.dtype), weight).astype(compute_dtype)
        b_in = jnp.tile(bias, R).reshape(1, R * O).astype(jnp.float32)
        n_cols = R * O
    else:
        G = BT
        x_in = payload.reshape(BT, H)
        w_in = weight.astype(compute_dtype)
        b_in = bias.reshape(1, O).astype(jnp.float32)
        n_cols = O

    K = R * H
    tm = max(8, block_rows // R)          # packed rows per tile (multiple of 8)
    tm_eff = G if G <= tm else tm         # single full-extent block for small inputs
    grid = (pl.cdiv(G, tm_eff),)          # trailing partial block is masked by Pallas

    cost = pl.CostEstimate(
        flops=2 * G * K * n_cols,
        transcendentals=BT * O,
        bytes_accessed=(x_in.size * x_in.dtype.itemsize
                        + w_in.size * w_in.dtype.itemsize
                        + b_in.size * b_in.dtype.itemsize
                        + G * n_cols * payload.dtype.itemsize),
    )

    out_packed = pl.pallas_call(
        _head_kernel,
        out_shape=jax.ShapeDtypeStruct((G, n_cols), payload.dtype),
        grid_spec=pltpu.PrefetchScalarGridSpec(
            num_scalar_prefetch=0,
            grid=grid,
            in_specs=[
                pl.BlockSpec((tm_eff, K), lambda i: (i, 0)),       # streamed payload rows
                pl.BlockSpec((K, n_cols), lambda i: (0, 0)),       # resident weight
                pl.BlockSpec((1, n_cols), lambda i: (0, 0)),       # resident bias
            ],
            out_specs=pl.BlockSpec((tm_eff, n_cols), lambda i: (i, 0)),
        ),
        compiler_params=pltpu.CompilerParams(
            dimension_semantics=("parallel",),
        ),
        cost_estimate=cost,
    )(x_in, w_in, b_in)

    out = out_packed.reshape(B, T, O)      # (G, R*O) -> (BT, O) -> (B, T, O); free
    return out, seq_lens


def _reference_bf16(payload, weight, bias):
    """Reference matching the kernel's bf16-operand / f32-accumulate path."""
    B, T, H = payload.shape
    z = jnp.dot(payload.reshape(B * T, H).astype(jnp.bfloat16),
                weight.astype(jnp.bfloat16),
                preferred_element_type=jnp.float32) + bias
    return jax.nn.sigmoid(z).astype(payload.dtype).reshape(B, T, -1)


def _reference_f32(payload, weight, bias):
    return jax.nn.sigmoid(jnp.einsum("bth,ho->bto", payload, weight) + bias)


def _check(payload, seq_lens, weight, bias):
    out, out_lens = all_steps_head(payload, seq_lens, weight, bias)
    out = jax.block_until_ready(out)
    B, T, _ = payload.shape
    O = weight.shape[1]
    assert out.shape == (B, T, O)
    ref_bf16 = _reference_bf16(payload, weight, bias)
    assert jnp.allclose(out, ref_bf16, atol=1e-3, rtol=1e-3), \
        "mismatch vs bf16-path reference"
    ref_f32 = _reference_f32(payload, weight, bias)
    assert jnp.allclose(out, ref_f32, atol=2e-2, rtol=2e-2), \
        "mismatch vs f32 reference"
    assert jnp.array_equal(out_lens, seq_lens)


if __name__ == "__main__":
    H, O = 32, 4
    key = jax.random.PRNGKey(0)
    kx, kw, kb, kx2 = jax.random.split(key, 4)

    # Deterministic synthetic head parameters (no checkpoint load).
    weight = jax.random.normal(kw, (H, O), dtype=jnp.float32) * 0.1
    bias = jax.random.normal(kb, (O,), dtype=jnp.float32) * 0.1

    # 1) Small shapes consistent with the module (B=2, T=8): plain fallback path.
    B, T = 2, 8
    payload = jax.random.normal(kx, (B, T, H), dtype=jnp.float32)
    seq_lens = jnp.array([T, T - 3], dtype=jnp.int32)
    _check(payload, seq_lens, weight, bias)

    # 2) B*T multiple of 128//O: exercises the lane-dense packed fast path.
    B2, T2 = 4, 64
    payload2 = jax.random.normal(kx2, (B2, T2, H), dtype=jnp.float32)
    seq_lens2 = jnp.array([T2, T2 - 5, 10, 1], dtype=jnp.int32)
    _check(payload2, seq_lens2, weight, bias)

    print("KERNEL_OK")
</pallas_src>

<mosaic_0001>
module attributes {stable_mosaic.version = 11 : i64} {
  func.func @_head_kernel(%arg0: i32, %arg1: memref<16x32xf32, #tpu.memory_space<vmem>>, %arg2: memref<32x4xbf16, #tpu.memory_space<vmem>>, %arg3: memref<1x4xf32, #tpu.memory_space<vmem>>, %arg4: memref<16x4xf32, #tpu.memory_space<vmem>>) attributes {dimension_semantics = [#tpu.dimension_semantics<parallel>], iteration_bounds = array<i64: 1>, scalar_prefetch = 0 : i64, scratch_operands = 0 : i64, tpu.core_type = #tpu.core_type<tc>, window_params = [{transform_indices = @transform_0, window_bounds = array<i64: 16, 32>}, {pipeline_mode = #tpu.pipeline_mode<synchronous>, transform_indices = @transform_1, window_bounds = array<i64: 32, 4>}, {pipeline_mode = #tpu.pipeline_mode<synchronous>, transform_indices = @transform_2, window_bounds = array<i64: 1, 4>}, {transform_indices = @transform_3, window_bounds = array<i64: 16, 4>}]} {
    %c0 = arith.constant 0 : index
    %c0_0 = arith.constant 0 : index
    %0 = vector.load %arg1[%c0, %c0_0] : memref<16x32xf32, #tpu.memory_space<vmem>>, vector<16x32xf32>
    %1 = arith.truncf %0 : vector<16x32xf32> to vector<16x32xbf16>
    %c0_1 = arith.constant 0 : index
    %c0_2 = arith.constant 0 : index
    %2 = vector.load %arg2[%c0_1, %c0_2] : memref<32x4xbf16, #tpu.memory_space<vmem>>, vector<32x4xbf16>
    %cst = arith.constant dense<0.000000e+00> : vector<16x4xf32>
    %3 = tpu.matmul %1, %2, %cst {dimension_numbers = #tpu.dot_dimension_numbers<[1], [0], [0], [1], [0, 0, 1, 1], [], []>} : vector<16x32xbf16>, vector<32x4xbf16>, vector<16x4xf32> -> vector<16x4xf32>
    %c0_3 = arith.constant 0 : index
    %c0_4 = arith.constant 0 : index
    %4 = vector.load %arg3[%c0_3, %c0_4] : memref<1x4xf32, #tpu.memory_space<vmem>>, vector<1x4xf32>
    %5 = vector.broadcast %4 : vector<1x4xf32> to vector<16x4xf32>
    %6 = arith.addf %3, %5 : vector<16x4xf32>
    %7 = arith.negf %6 : vector<16x4xf32>
    %8 = math.exp %7 : vector<16x4xf32>
    %cst_5 = arith.constant 1.000000e+00 : f32
    %9 = vector.broadcast %cst_5 : f32 to vector<16x4xf32>
    %10 = arith.addf %9, %8 : vector<16x4xf32>
    %11 = arith.divf %9, %10 : vector<16x4xf32>
    %c0_6 = arith.constant 0 : index
    %c0_7 = arith.constant 0 : index
    %12 = vector.load %arg4[%c0_6, %c0_7] : memref<16x4xf32, #tpu.memory_space<vmem>>, vector<16x4xf32>
    tpu.vector_store %arg4[%c0_6, %c0_7], %11 {strides = array<i32>} : memref<16x4xf32, #tpu.memory_space<vmem>>, vector<16x4xf32>,
    return
  }
  func.func @transform_0(%arg0: i32) -> (i32, i32) {
    %c0_i32 = arith.constant 0 : i32
    %c0_i32_0 = arith.constant 0 : i32
    return %arg0, %c0_i32 : i32, i32
  }
  func.func @transform_1(%arg0: i32) -> (i32, i32) {
    %c0_i32 = arith.constant 0 : i32
    %c0_i32_0 = arith.constant 0 : i32
    %c0_i32_1 = arith.constant 0 : i32
    return %c0_i32, %c0_i32_0 : i32, i32
  }
  func.func @transform_2(%arg0: i32) -> (i32, i32) {
    %c0_i32 = arith.constant 0 : i32
    %c0_i32_0 = arith.constant 0 : i32
    %c0_i32_1 = arith.constant 0 : i32
    return %c0_i32, %c0_i32_0 : i32, i32
  }
  func.func @transform_3(%arg0: i32) -> (i32, i32) {
    %c0_i32 = arith.constant 0 : i32
    %c0_i32_0 = arith.constant 0 : i32
    return %arg0, %c0_i32 : i32, i32
  }
}

</mosaic_0001>

<bundles_post_ra>
// kernel: tpu_custom_call.1
= control target key start
LH: loop header
LB: loop body
LE: loop exit
PB: predicated region body
PF: predicated region fallthrough
CT: control target
= control target key end

     0   :  { %v134_v0 = vmov 0.0   ;;  %vm135_vm0 = vmmov 0   ;;  %vm41_vm1 = vcmask 261120   ;;  %vm98_vm2 = vcmask 31744   ;;  %s177_s1 = inlined_call_operand.vmem [shape: bf16[32,4], index: 1, kind: input, shape index: {}]   ;;  %s178_s0 = inlined_call_operand.vmem [shape: f32[16,32], index: 0, kind: input, shape index: {}]   ;;  %s179_s2 = inlined_call_operand.vmem [shape: f32[1,4], index: 2, kind: input, shape index: {}]   ;;  %s180_s3 = inlined_call_operand.vmem [shape: f32[16,4], index: 3, kind: output, shape index: {}]  }
   0x1   :  { %114 = vmatprep.subr.bf16.mxu0 %v134_v0  ;;  %v124_v1 = vld [vmem:[%s177_s1 + $0x8] sm:$0xff]   ;;  %118 = vmatprep.mubr.msk.bf16.mxu0 %vm135_vm0, %v134_v0  ;;  %v125_v2 = vld [vmem:[%s177_s1] sm:$0xff]  }
   0x2   :  { %115 = vmatpush3.bf16.msra.mxu0 %v124_v1  ;;  %v15_v3 = vld [vmem:[%s178_s0] sm:$0xff]  ;;  %v16_v4 = vld [vmem:[%s178_s0 + $0x8] sm:$0xff] }
   0x3   :  { %116 = vmatprep.subr.bf16.mxu0 %v134_v0  ;;  %v17_v5 = vpack.c.bf16 %v16_v4, %v15_v3  ;;  %v105_v6 = vld [vmem:[%s179_s2] ss:$0 sm:$0xff] }
   0x6   :  { %117 = vmatpush3.bf16.msra.mxu0 %v125_v2 }
   0x9   :  { %119 = vmatmul.mubr.msk.bf16.vlgmr.msra.gmra.mxu0 %vm41_vm1, %v17_v5 }
  0xc9   :  { %v79_v7 = vpop.f32.mrf.mxu0 }
  0xca   :  { %v80_v8 = vadd.f32 %v105_v6, %v79_v7 }
  0xcb   :  { %v120_v9 = vpop.f32.mrf.mxu0 }
  0xcc   :  { %v109_v10 = vmul.f32 -1.442695, %v80_v8 }
  0xcd   :  { %v82_v11 = vpop.f32.mrf.mxu0 }
  0xce   :  { %126 = vpow2.f32 %v109_v10  ;;  %v83_v12 = vadd.f32 %v105_v6, %v82_v11 }
  0xcf   :  { %v121_v13 = vpop.f32.mrf.mxu0 }
  0xd0   :  { %v110_v14 = vmul.f32 -1.442695, %v83_v12 }
  0xd2   :  { %128 = vpow2.f32 %v110_v14 }
  0xdb   :  { %v127_v15 = vpop.eup %126 }
  0xdc   :  { %v92_v16 = vadd.f32 1.0, %v127_v15 }
  0xde   :  { %130 = vrcp.f32 %v92_v16 }
  0xdf   :  { %v129_v17 = vpop.eup %128 }
  0xe0   :  { %v93_v18 = vadd.f32 1.0, %v129_v17 }
  0xe2   :  { %132 = vrcp.f32 %v93_v18 }
  0xeb   :  { %v131_v19 = vpop.eup %130 }
  0xec   :  { %99 = vst.msk [vmem:[%s180_s3] sm:$0xff] %vm98_vm2, %v131_v19 }
  0xef   :  { %v133_v20 = vpop.eup %132 }
  0xf0   :  { %100 = vst.msk [vmem:[%s180_s3 + $0x8] sm:$0xff] %vm98_vm2, %v133_v20 }

</bundles_post_ra>
